<compile_context>
chip_gen: v7x
topology: tpu7x:2x2x1
jax: 0.10.0
libtpu: 0.0.40
codegen_flags: <defaults>
</compile_context>

<pallas_src>
import math

import jax
import jax.numpy as jnp
from jax.experimental import pallas as pl
from jax.experimental.pallas import tpu as pltpu


def _make_kernel(R, P, E_tok, E_u):
    """Build the kernel closure for a tile of R fused rows, lane-pack factor P."""
    E = E_tok + E_u
    RP = R // P  # packed rows per tile

    def kernel(seq_ids, usr_ids,            # SMEM scalar prefetch, shape (N,)
               tok_ref, utab_ref, pos_ref,  # VMEM: (V,E_tok), (U,E_u), (RP,P*E)
               x_ref, uemb_ref):            # VMEM out: (RP,P*E), (R,E_u)
        base = pl.program_id(0) * R

        def gather_rows(rp):
            # P fused rows share one packed (128-lane) output row; lane offsets
            # are static so every store below is a static lane slice.
            for j in range(P):
                r = rp * P + j
                tid = seq_ids[base + r]
                uid = usr_ids[base + r]
                trow = tok_ref[pl.ds(tid, 1), :].astype(jnp.float32)   # (1, E_tok)
                urow = utab_ref[pl.ds(uid, 1), :].astype(jnp.float32)  # (1, E_u)
                x_ref[pl.ds(rp, 1), j * E:j * E + E_tok] = trow
                x_ref[pl.ds(rp, 1), j * E + E_tok:(j + 1) * E] = urow
                uemb_ref[pl.ds(r, 1), :] = urow.astype(uemb_ref.dtype)

        if RP <= 32:                         # short tiles: fully unrolled
            for rp in range(RP):
                gather_rows(rp)
        else:                                # long tiles: in-kernel loop
            @pl.loop(0, RP)
            def _(rp):
                gather_rows(rp)

        # Fused positional add: one dense, full-width (128-lane) add + store.
        x_ref[...] = x_ref[...] + pos_ref[...]

    return kernel


def bert_user_embedding(sequence, user, token_table, user_table, pos_table,
                        *, max_rows_per_step=2048):
    """sequence, user: (B, T) int32.  Returns (x:(B,T,E), user_embs:(B,T,E_u))."""
    B, T = sequence.shape
    V, E_tok = token_table.shape
    U, E_u = user_table.shape
    E = E_tok + E_u
    assert pos_table.shape[0] >= T and pos_table.shape[1] == E
    N = B * T

    # Tables must fit comfortably in VMEM (conservative bound valid on v7x too).
    itemsize = lambda a: a.size * a.dtype.itemsize
    table_bytes = itemsize(token_table) + itemsize(user_table)
    assert table_bytes <= 24 * (1 << 20), (
        "embedding tables too large for the VMEM-resident gather path")

    # Lane-pack factor: P fused rows of width E share one 128-lane vreg row.
    P = 128 // E if (E < 128 and 128 % E == 0) else 1
    if N % P != 0:
        P = 1

    # Rows per grid step: whole batch rows (so one positional block serves every
    # step); R//P must be a multiple of 8 unless the tile covers the full array.
    cands = [tb for tb in range(1, B + 1)
             if B % tb == 0 and (tb * T) % (8 * P) == 0
             and tb * T <= max_rows_per_step]
    if cands:
        multi = [tb for tb in cands if tb < B]   # prefer >=2 steps (megacore)
        tile_b = max(multi) if multi else max(cands)
    else:
        tile_b = B                               # single step, full-array blocks
    R = tile_b * T
    RP = R // P
    grid = (N // R,)

    # Ids to SMEM (scalar prefetch); clamp so dynamic slices never read OOB.
    seq_flat = jnp.clip(sequence.reshape(N).astype(jnp.int32), 0, V - 1)
    usr_flat = jnp.clip(user.reshape(N).astype(jnp.int32), 0, U - 1)

    # Positional rows for one tile, pre-packed into the lane-dense layout.
    pos = pos_table[:T].astype(jnp.float32)
    pos_tile = jnp.tile(pos, (tile_b, 1)).reshape(RP, P * E)

    kernel = _make_kernel(R, P, E_tok, E_u)

    out_shape = (jax.ShapeDtypeStruct((N // P, P * E), jnp.float32),  # packed x
                 jax.ShapeDtypeStruct((N, E_u), jnp.float32))         # user embs

    # Explicit VMEM budget: tables + (double-buffered) pos/x/uemb blocks + slack.
    block_bytes = (pos_tile.size + RP * P * E + R * E_u) * 4
    need = 2 * table_bytes + 2 * block_bytes
    vmem_limit = int(min(max(2 * need + (4 << 20), 16 << 20), 64 << 20))

    x_packed, uemb_flat = pl.pallas_call(
        kernel,
        out_shape=out_shape,
        grid_spec=pltpu.PrefetchScalarGridSpec(
            num_scalar_prefetch=2,
            grid=grid,
            in_specs=[
                # Full tables resident in VMEM -> in-VMEM gather, zero DMAs/row.
                pl.BlockSpec((V, E_tok), lambda g, seq, usr: (0, 0)),
                pl.BlockSpec((U, E_u), lambda g, seq, usr: (0, 0)),
                pl.BlockSpec((RP, P * E), lambda g, seq, usr: (0, 0)),
            ],
            out_specs=[
                pl.BlockSpec((RP, P * E), lambda g, seq, usr: (g, 0)),
                pl.BlockSpec((R, E_u), lambda g, seq, usr: (g, 0)),
            ],
        ),
        compiler_params=pltpu.CompilerParams(
            dimension_semantics=("parallel",),
            vmem_limit_bytes=vmem_limit),
    )(seq_flat, usr_flat, token_table, user_table, pos_tile)

    # (N//P, P*E) row-major is bit-identical to (N, E); reshapes are free here.
    return x_packed.reshape(B, T, E), uemb_flat.reshape(B, T, E_u)


def sinusoidal_pos_emb(max_len, d_model):
    """Matches BERT4Rec PositionalEmbedding buffer `pe` (max_len, d_model)."""
    position = jnp.arange(max_len, dtype=jnp.float32)[:, None]
    div_term = jnp.exp(jnp.arange(0, d_model, 2, dtype=jnp.float32)
                       * -(math.log(10000.0) / d_model))
    pe = jnp.zeros((max_len, d_model), jnp.float32)
    pe = pe.at[:, 0::2].set(jnp.sin(position * div_term))
    pe = pe.at[:, 1::2].set(jnp.cos(position * div_term))
    return pe


if __name__ == "__main__":
    # Small shapes consistent with the module's forward.
    B, T = 2, 8                 # batch, sequence length
    MAX_LEN = 16                # positional table length (>= T)
    VOCAB, USERS = 40, 6
    EMBED, U_EMBED = 32, 8
    TOK_EMBED = EMBED - U_EMBED

    key = jax.random.PRNGKey(0)
    k_tok, k_usr, k_seq, k_uid = jax.random.split(key, 4)

    # Deterministic parameter init (synthetic; no checkpoint load).
    token_table = 0.02 * jax.random.normal(k_tok, (VOCAB, TOK_EMBED), jnp.float32)
    token_table = token_table.at[0].set(0.0)     # padding_idx=0 as in TokenEmbedding
    user_table = 0.02 * jax.random.normal(k_usr, (USERS, U_EMBED), jnp.float32)

    sequence = jax.random.randint(k_seq, (B, T), 0, VOCAB, dtype=jnp.int32)
    user = jnp.tile(jax.random.randint(k_uid, (B, 1), 0, USERS, dtype=jnp.int32),
                    (1, T))

    pos_table = sinusoidal_pos_emb(MAX_LEN, EMBED)

    fwd = jax.jit(bert_user_embedding)
    x, user_embs = fwd(sequence, user, token_table, user_table, pos_table)
    jax.block_until_ready((x, user_embs))

    # Pure-JAX reference check.
    ref_tok = token_table[sequence]
    ref_usr = user_table[user]
    ref_x = jnp.concatenate([ref_tok, ref_usr], axis=-1) + pos_table[:T][None]
    assert x.shape == (B, T, EMBED) and user_embs.shape == (B, T, U_EMBED)
    assert jnp.allclose(x, ref_x, atol=1e-5)
    assert jnp.allclose(user_embs, ref_usr, atol=1e-5)

    print("KERNEL_OK")
</pallas_src>

<mosaic_0001>
module attributes {stable_mosaic.version = 11 : i64} {
  func.func @kernel(%arg0: i32, %arg1: memref<16xi32, #tpu.memory_space<smem>>, %arg2: memref<16xi32, #tpu.memory_space<smem>>, %arg3: memref<40x24xf32, #tpu.memory_space<vmem>>, %arg4: memref<6x8xf32, #tpu.memory_space<vmem>>, %arg5: memref<4x128xf32, #tpu.memory_space<vmem>>, %arg6: memref<4x128xf32, #tpu.memory_space<vmem>>, %arg7: memref<16x8xf32, #tpu.memory_space<vmem>>) attributes {dimension_semantics = [#tpu.dimension_semantics<parallel>], iteration_bounds = array<i64: 1>, scalar_prefetch = 2 : i64, scratch_operands = 0 : i64, tpu.core_type = #tpu.core_type<tc>, window_params = [{pipeline_mode = #tpu.pipeline_mode<synchronous>, transform_indices = @transform_0, window_bounds = array<i64: 40, 24>}, {pipeline_mode = #tpu.pipeline_mode<synchronous>, transform_indices = @transform_1, window_bounds = array<i64: 6, 8>}, {pipeline_mode = #tpu.pipeline_mode<synchronous>, transform_indices = @transform_2, window_bounds = array<i64: 4, 128>}, {transform_indices = @transform_3, window_bounds = array<i64: 4, 128>}, {transform_indices = @transform_4, window_bounds = array<i64: 16, 8>}]} {
    %c16_i32 = arith.constant 16 : i32
    %0 = arith.muli %arg0, %c16_i32 : i32
    %c0_i32 = arith.constant 0 : i32
    %1 = arith.addi %0, %c0_i32 : i32
    %2 = arith.index_cast %1 : i32 to index
    %3 = memref.load %arg1[%2] : memref<16xi32, #tpu.memory_space<smem>>
    %c0_i32_0 = arith.constant 0 : i32
    %4 = arith.addi %0, %c0_i32_0 : i32
    %5 = arith.index_cast %4 : i32 to index
    %6 = memref.load %arg2[%5] : memref<16xi32, #tpu.memory_space<smem>>
    %7 = arith.index_cast %3 : i32 to index
    %c0 = arith.constant 0 : index
    %8 = vector.load %arg3[%7, %c0] : memref<40x24xf32, #tpu.memory_space<vmem>>, vector<1x24xf32>
    %9 = arith.index_cast %6 : i32 to index
    %c0_1 = arith.constant 0 : index
    %10 = vector.load %arg4[%9, %c0_1] : memref<6x8xf32, #tpu.memory_space<vmem>>, vector<1x8xf32>
    %c0_2 = arith.constant 0 : index
    %c0_3 = arith.constant 0 : index
    %11 = vector.load %arg6[%c0_2, %c0_3] : memref<4x128xf32, #tpu.memory_space<vmem>>, vector<1x24xf32>
    tpu.vector_store %arg6[%c0_2, %c0_3], %8 {strides = array<i32>} : memref<4x128xf32, #tpu.memory_space<vmem>>, vector<1x24xf32>,
    %c0_4 = arith.constant 0 : index
    %c24 = arith.constant 24 : index
    %12 = vector.load %arg6[%c0_4, %c24] : memref<4x128xf32, #tpu.memory_space<vmem>>, vector<1x8xf32>
    tpu.vector_store %arg6[%c0_4, %c24], %10 {strides = array<i32>} : memref<4x128xf32, #tpu.memory_space<vmem>>, vector<1x8xf32>,
    %c0_5 = arith.constant 0 : index
    %c0_6 = arith.constant 0 : index
    %13 = vector.load %arg7[%c0_5, %c0_6] : memref<16x8xf32, #tpu.memory_space<vmem>>, vector<1x8xf32>
    tpu.vector_store %arg7[%c0_5, %c0_6], %10 {strides = array<i32>} : memref<16x8xf32, #tpu.memory_space<vmem>>, vector<1x8xf32>,
    %c1_i32 = arith.constant 1 : i32
    %14 = arith.addi %0, %c1_i32 : i32
    %15 = arith.index_cast %14 : i32 to index
    %16 = memref.load %arg1[%15] : memref<16xi32, #tpu.memory_space<smem>>
    %c1_i32_7 = arith.constant 1 : i32
    %17 = arith.addi %0, %c1_i32_7 : i32
    %18 = arith.index_cast %17 : i32 to index
    %19 = memref.load %arg2[%18] : memref<16xi32, #tpu.memory_space<smem>>
    %20 = arith.index_cast %16 : i32 to index
    %c0_8 = arith.constant 0 : index
    %21 = vector.load %arg3[%20, %c0_8] : memref<40x24xf32, #tpu.memory_space<vmem>>, vector<1x24xf32>
    %22 = arith.index_cast %19 : i32 to index
    %c0_9 = arith.constant 0 : index
    %23 = vector.load %arg4[%22, %c0_9] : memref<6x8xf32, #tpu.memory_space<vmem>>, vector<1x8xf32>
    %c0_10 = arith.constant 0 : index
    %c32 = arith.constant 32 : index
    %24 = vector.load %arg6[%c0_10, %c32] : memref<4x128xf32, #tpu.memory_space<vmem>>, vector<1x24xf32>
    tpu.vector_store %arg6[%c0_10, %c32], %21 {strides = array<i32>} : memref<4x128xf32, #tpu.memory_space<vmem>>, vector<1x24xf32>,
    %c0_11 = arith.constant 0 : index
    %c56 = arith.constant 56 : index
    %25 = vector.load %arg6[%c0_11, %c56] : memref<4x128xf32, #tpu.memory_space<vmem>>, vector<1x8xf32>
    tpu.vector_store %arg6[%c0_11, %c56], %23 {strides = array<i32>} : memref<4x128xf32, #tpu.memory_space<vmem>>, vector<1x8xf32>,
    %c1 = arith.constant 1 : index
    %c0_12 = arith.constant 0 : index
    %26 = vector.load %arg7[%c1, %c0_12] : memref<16x8xf32, #tpu.memory_space<vmem>>, vector<1x8xf32>
    tpu.vector_store %arg7[%c1, %c0_12], %23 {strides = array<i32>} : memref<16x8xf32, #tpu.memory_space<vmem>>, vector<1x8xf32>,
    %c2_i32 = arith.constant 2 : i32
    %27 = arith.addi %0, %c2_i32 : i32
    %28 = arith.index_cast %27 : i32 to index
    %29 = memref.load %arg1[%28] : memref<16xi32, #tpu.memory_space<smem>>
    %c2_i32_13 = arith.constant 2 : i32
    %30 = arith.addi %0, %c2_i32_13 : i32
    %31 = arith.index_cast %30 : i32 to index
    %32 = memref.load %arg2[%31] : memref<16xi32, #tpu.memory_space<smem>>
    %33 = arith.index_cast %29 : i32 to index
    %c0_14 = arith.constant 0 : index
    %34 = vector.load %arg3[%33, %c0_14] : memref<40x24xf32, #tpu.memory_space<vmem>>, vector<1x24xf32>
    %35 = arith.index_cast %32 : i32 to index
    %c0_15 = arith.constant 0 : index
    %36 = vector.load %arg4[%35, %c0_15] : memref<6x8xf32, #tpu.memory_space<vmem>>, vector<1x8xf32>
    %c0_16 = arith.constant 0 : index
    %c64 = arith.constant 64 : index
    %37 = vector.load %arg6[%c0_16, %c64] : memref<4x128xf32, #tpu.memory_space<vmem>>, vector<1x24xf32>
    tpu.vector_store %arg6[%c0_16, %c64], %34 {strides = array<i32>} : memref<4x128xf32, #tpu.memory_space<vmem>>, vector<1x24xf32>,
    %c0_17 = arith.constant 0 : index
    %c88 = arith.constant 88 : index
    %38 = vector.load %arg6[%c0_17, %c88] : memref<4x128xf32, #tpu.memory_space<vmem>>, vector<1x8xf32>
    tpu.vector_store %arg6[%c0_17, %c88], %36 {strides = array<i32>} : memref<4x128xf32, #tpu.memory_space<vmem>>, vector<1x8xf32>,
    %c2 = arith.constant 2 : index
    %c0_18 = arith.constant 0 : index
    %39 = vector.load %arg7[%c2, %c0_18] : memref<16x8xf32, #tpu.memory_space<vmem>>, vector<1x8xf32>
    tpu.vector_store %arg7[%c2, %c0_18], %36 {strides = array<i32>} : memref<16x8xf32, #tpu.memory_space<vmem>>, vector<1x8xf32>,
    %c3_i32 = arith.constant 3 : i32
    %40 = arith.addi %0, %c3_i32 : i32
    %41 = arith.index_cast %40 : i32 to index
    %42 = memref.load %arg1[%41] : memref<16xi32, #tpu.memory_space<smem>>
    %c3_i32_19 = arith.constant 3 : i32
    %43 = arith.addi %0, %c3_i32_19 : i32
    %44 = arith.index_cast %43 : i32 to index
    %45 = memref.load %arg2[%44] : memref<16xi32, #tpu.memory_space<smem>>
    %46 = arith.index_cast %42 : i32 to index
    %c0_20 = arith.constant 0 : index
    %47 = vector.load %arg3[%46, %c0_20] : memref<40x24xf32, #tpu.memory_space<vmem>>, vector<1x24xf32>
    %48 = arith.index_cast %45 : i32 to index
    %c0_21 = arith.constant 0 : index
    %49 = vector.load %arg4[%48, %c0_21] : memref<6x8xf32, #tpu.memory_space<vmem>>, vector<1x8xf32>
    %c0_22 = arith.constant 0 : index
    %c96 = arith.constant 96 : index
    %50 = vector.load %arg6[%c0_22, %c96] : memref<4x128xf32, #tpu.memory_space<vmem>>, vector<1x24xf32>
    tpu.vector_store %arg6[%c0_22, %c96], %47 {strides = array<i32>} : memref<4x128xf32, #tpu.memory_space<vmem>>, vector<1x24xf32>,
    %c0_23 = arith.constant 0 : index
    %c120 = arith.constant 120 : index
    %51 = vector.load %arg6[%c0_23, %c120] : memref<4x128xf32, #tpu.memory_space<vmem>>, vector<1x8xf32>
    tpu.vector_store %arg6[%c0_23, %c120], %49 {strides = array<i32>} : memref<4x128xf32, #tpu.memory_space<vmem>>, vector<1x8xf32>,
    %c3 = arith.constant 3 : index
    %c0_24 = arith.constant 0 : index
    %52 = vector.load %arg7[%c3, %c0_24] : memref<16x8xf32, #tpu.memory_space<vmem>>, vector<1x8xf32>
    tpu.vector_store %arg7[%c3, %c0_24], %49 {strides = array<i32>} : memref<16x8xf32, #tpu.memory_space<vmem>>, vector<1x8xf32>,
    %c4_i32 = arith.constant 4 : i32
    %53 = arith.addi %0, %c4_i32 : i32
    %54 = arith.index_cast %53 : i32 to index
    %55 = memref.load %arg1[%54] : memref<16xi32, #tpu.memory_space<smem>>
    %c4_i32_25 = arith.constant 4 : i32
    %56 = arith.addi %0, %c4_i32_25 : i32
    %57 = arith.index_cast %56 : i32 to index
    %58 = memref.load %arg2[%57] : memref<16xi32, #tpu.memory_space<smem>>
    %59 = arith.index_cast %55 : i32 to index
    %c0_26 = arith.constant 0 : index
    %60 = vector.load %arg3[%59, %c0_26] : memref<40x24xf32, #tpu.memory_space<vmem>>, vector<1x24xf32>
    %61 = arith.index_cast %58 : i32 to index
    %c0_27 = arith.constant 0 : index
    %62 = vector.load %arg4[%61, %c0_27] : memref<6x8xf32, #tpu.memory_space<vmem>>, vector<1x8xf32>
    %c1_28 = arith.constant 1 : index
    %c0_29 = arith.constant 0 : index
    %63 = vector.load %arg6[%c1_28, %c0_29] : memref<4x128xf32, #tpu.memory_space<vmem>>, vector<1x24xf32>
    tpu.vector_store %arg6[%c1_28, %c0_29], %60 {strides = array<i32>} : memref<4x128xf32, #tpu.memory_space<vmem>>, vector<1x24xf32>,
    %c1_30 = arith.constant 1 : index
    %c24_31 = arith.constant 24 : index
    %64 = vector.load %arg6[%c1_30, %c24_31] : memref<4x128xf32, #tpu.memory_space<vmem>>, vector<1x8xf32>
    tpu.vector_store %arg6[%c1_30, %c24_31], %62 {strides = array<i32>} : memref<4x128xf32, #tpu.memory_space<vmem>>, vector<1x8xf32>,
    %c4 = arith.constant 4 : index
    %c0_32 = arith.constant 0 : index
    %65 = vector.load %arg7[%c4, %c0_32] : memref<16x8xf32, #tpu.memory_space<vmem>>, vector<1x8xf32>
    tpu.vector_store %arg7[%c4, %c0_32], %62 {strides = array<i32>} : memref<16x8xf32, #tpu.memory_space<vmem>>, vector<1x8xf32>,
    %c5_i32 = arith.constant 5 : i32
    %66 = arith.addi %0, %c5_i32 : i32
    %67 = arith.index_cast %66 : i32 to index
    %68 = memref.load %arg1[%67] : memref<16xi32, #tpu.memory_space<smem>>
    %c5_i32_33 = arith.constant 5 : i32
    %69 = arith.addi %0, %c5_i32_33 : i32
    %70 = arith.index_cast %69 : i32 to index
    %71 = memref.load %arg2[%70] : memref<16xi32, #tpu.memory_space<smem>>
    %72 = arith.index_cast %68 : i32 to index
    %c0_34 = arith.constant 0 : index
    %73 = vector.load %arg3[%72, %c0_34] : memref<40x24xf32, #tpu.memory_space<vmem>>, vector<1x24xf32>
    %74 = arith.index_cast %71 : i32 to index
    %c0_35 = arith.constant 0 : index
    %75 = vector.load %arg4[%74, %c0_35] : memref<6x8xf32, #tpu.memory_space<vmem>>, vector<1x8xf32>
    %c1_36 = arith.constant 1 : index
    %c32_37 = arith.constant 32 : index
    %76 = vector.load %arg6[%c1_36, %c32_37] : memref<4x128xf32, #tpu.memory_space<vmem>>, vector<1x24xf32>
    tpu.vector_store %arg6[%c1_36, %c32_37], %73 {strides = array<i32>} : memref<4x128xf32, #tpu.memory_space<vmem>>, vector<1x24xf32>,
    %c1_38 = arith.constant 1 : index
    %c56_39 = arith.constant 56 : index
    %77 = vector.load %arg6[%c1_38, %c56_39] : memref<4x128xf32, #tpu.memory_space<vmem>>, vector<1x8xf32>
    tpu.vector_store %arg6[%c1_38, %c56_39], %75 {strides = array<i32>} : memref<4x128xf32, #tpu.memory_space<vmem>>, vector<1x8xf32>,
    %c5 = arith.constant 5 : index
    %c0_40 = arith.constant 0 : index
    %78 = vector.load %arg7[%c5, %c0_40] : memref<16x8xf32, #tpu.memory_space<vmem>>, vector<1x8xf32>
    tpu.vector_store %arg7[%c5, %c0_40], %75 {strides = array<i32>} : memref<16x8xf32, #tpu.memory_space<vmem>>, vector<1x8xf32>,
    %c6_i32 = arith.constant 6 : i32
    %79 = arith.addi %0, %c6_i32 : i32
    %80 = arith.index_cast %79 : i32 to index
    %81 = memref.load %arg1[%80] : memref<16xi32, #tpu.memory_space<smem>>
    %c6_i32_41 = arith.constant 6 : i32
    %82 = arith.addi %0, %c6_i32_41 : i32
    %83 = arith.index_cast %82 : i32 to index
    %84 = memref.load %arg2[%83] : memref<16xi32, #tpu.memory_space<smem>>
    %85 = arith.index_cast %81 : i32 to index
    %c0_42 = arith.constant 0 : index
    %86 = vector.load %arg3[%85, %c0_42] : memref<40x24xf32, #tpu.memory_space<vmem>>, vector<1x24xf32>
    %87 = arith.index_cast %84 : i32 to index
    %c0_43 = arith.constant 0 : index
    %88 = vector.load %arg4[%87, %c0_43] : memref<6x8xf32, #tpu.memory_space<vmem>>, vector<1x8xf32>
    %c1_44 = arith.constant 1 : index
    %c64_45 = arith.constant 64 : index
    %89 = vector.load %arg6[%c1_44, %c64_45] : memref<4x128xf32, #tpu.memory_space<vmem>>, vector<1x24xf32>
    tpu.vector_store %arg6[%c1_44, %c64_45], %86 {strides = array<i32>} : memref<4x128xf32, #tpu.memory_space<vmem>>, vector<1x24xf32>,
    %c1_46 = arith.constant 1 : index
    %c88_47 = arith.constant 88 : index
    %90 = vector.load %arg6[%c1_46, %c88_47] : memref<4x128xf32, #tpu.memory_space<vmem>>, vector<1x8xf32>
    tpu.vector_store %arg6[%c1_46, %c88_47], %88 {strides = array<i32>} : memref<4x128xf32, #tpu.memory_space<vmem>>, vector<1x8xf32>,
    %c6 = arith.constant 6 : index
    %c0_48 = arith.constant 0 : index
    %91 = vector.load %arg7[%c6, %c0_48] : memref<16x8xf32, #tpu.memory_space<vmem>>, vector<1x8xf32>
    tpu.vector_store %arg7[%c6, %c0_48], %88 {strides = array<i32>} : memref<16x8xf32, #tpu.memory_space<vmem>>, vector<1x8xf32>,
    %c7_i32 = arith.constant 7 : i32
    %92 = arith.addi %0, %c7_i32 : i32
    %93 = arith.index_cast %92 : i32 to index
    %94 = memref.load %arg1[%93] : memref<16xi32, #tpu.memory_space<smem>>
    %c7_i32_49 = arith.constant 7 : i32
    %95 = arith.addi %0, %c7_i32_49 : i32
    %96 = arith.index_cast %95 : i32 to index
    %97 = memref.load %arg2[%96] : memref<16xi32, #tpu.memory_space<smem>>
    %98 = arith.index_cast %94 : i32 to index
    %c0_50 = arith.constant 0 : index
    %99 = vector.load %arg3[%98, %c0_50] : memref<40x24xf32, #tpu.memory_space<vmem>>, vector<1x24xf32>
    %100 = arith.index_cast %97 : i32 to index
    %c0_51 = arith.constant 0 : index
    %101 = vector.load %arg4[%100, %c0_51] : memref<6x8xf32, #tpu.memory_space<vmem>>, vector<1x8xf32>
    %c1_52 = arith.constant 1 : index
    %c96_53 = arith.constant 96 : index
    %102 = vector.load %arg6[%c1_52, %c96_53] : memref<4x128xf32, #tpu.memory_space<vmem>>, vector<1x24xf32>
    tpu.vector_store %arg6[%c1_52, %c96_53], %99 {strides = array<i32>} : memref<4x128xf32, #tpu.memory_space<vmem>>, vector<1x24xf32>,
    %c1_54 = arith.constant 1 : index
    %c120_55 = arith.constant 120 : index
    %103 = vector.load %arg6[%c1_54, %c120_55] : memref<4x128xf32, #tpu.memory_space<vmem>>, vector<1x8xf32>
    tpu.vector_store %arg6[%c1_54, %c120_55], %101 {strides = array<i32>} : memref<4x128xf32, #tpu.memory_space<vmem>>, vector<1x8xf32>,
    %c7 = arith.constant 7 : index
    %c0_56 = arith.constant 0 : index
    %104 = vector.load %arg7[%c7, %c0_56] : memref<16x8xf32, #tpu.memory_space<vmem>>, vector<1x8xf32>
    tpu.vector_store %arg7[%c7, %c0_56], %101 {strides = array<i32>} : memref<16x8xf32, #tpu.memory_space<vmem>>, vector<1x8xf32>,
    %c8_i32 = arith.constant 8 : i32
    %105 = arith.addi %0, %c8_i32 : i32
    %106 = arith.index_cast %105 : i32 to index
    %107 = memref.load %arg1[%106] : memref<16xi32, #tpu.memory_space<smem>>
    %c8_i32_57 = arith.constant 8 : i32
    %108 = arith.addi %0, %c8_i32_57 : i32
    %109 = arith.index_cast %108 : i32 to index
    %110 = memref.load %arg2[%109] : memref<16xi32, #tpu.memory_space<smem>>
    %111 = arith.index_cast %107 : i32 to index
    %c0_58 = arith.constant 0 : index
    %112 = vector.load %arg3[%111, %c0_58] : memref<40x24xf32, #tpu.memory_space<vmem>>, vector<1x24xf32>
    %113 = arith.index_cast %110 : i32 to index
    %c0_59 = arith.constant 0 : index
    %114 = vector.load %arg4[%113, %c0_59] : memref<6x8xf32, #tpu.memory_space<vmem>>, vector<1x8xf32>
    %c2_60 = arith.constant 2 : index
    %c0_61 = arith.constant 0 : index
    %115 = vector.load %arg6[%c2_60, %c0_61] : memref<4x128xf32, #tpu.memory_space<vmem>>, vector<1x24xf32>
    tpu.vector_store %arg6[%c2_60, %c0_61], %112 {strides = array<i32>} : memref<4x128xf32, #tpu.memory_space<vmem>>, vector<1x24xf32>,
    %c2_62 = arith.constant 2 : index
    %c24_63 = arith.constant 24 : index
    %116 = vector.load %arg6[%c2_62, %c24_63] : memref<4x128xf32, #tpu.memory_space<vmem>>, vector<1x8xf32>
    tpu.vector_store %arg6[%c2_62, %c24_63], %114 {strides = array<i32>} : memref<4x128xf32, #tpu.memory_space<vmem>>, vector<1x8xf32>,
    %c8 = arith.constant 8 : index
    %c0_64 = arith.constant 0 : index
    %117 = vector.load %arg7[%c8, %c0_64] : memref<16x8xf32, #tpu.memory_space<vmem>>, vector<1x8xf32>
    tpu.vector_store %arg7[%c8, %c0_64], %114 {strides = array<i32>} : memref<16x8xf32, #tpu.memory_space<vmem>>, vector<1x8xf32>,
    %c9_i32 = arith.constant 9 : i32
    %118 = arith.addi %0, %c9_i32 : i32
    %119 = arith.index_cast %118 : i32 to index
    %120 = memref.load %arg1[%119] : memref<16xi32, #tpu.memory_space<smem>>
    %c9_i32_65 = arith.constant 9 : i32
    %121 = arith.addi %0, %c9_i32_65 : i32
    %122 = arith.index_cast %121 : i32 to index
    %123 = memref.load %arg2[%122] : memref<16xi32, #tpu.memory_space<smem>>
    %124 = arith.index_cast %120 : i32 to index
    %c0_66 = arith.constant 0 : index
    %125 = vector.load %arg3[%124, %c0_66] : memref<40x24xf32, #tpu.memory_space<vmem>>, vector<1x24xf32>
    %126 = arith.index_cast %123 : i32 to index
    %c0_67 = arith.constant 0 : index
    %127 = vector.load %arg4[%126, %c0_67] : memref<6x8xf32, #tpu.memory_space<vmem>>, vector<1x8xf32>
    %c2_68 = arith.constant 2 : index
    %c32_69 = arith.constant 32 : index
    %128 = vector.load %arg6[%c2_68, %c32_69] : memref<4x128xf32, #tpu.memory_space<vmem>>, vector<1x24xf32>
    tpu.vector_store %arg6[%c2_68, %c32_69], %125 {strides = array<i32>} : memref<4x128xf32, #tpu.memory_space<vmem>>, vector<1x24xf32>,
    %c2_70 = arith.constant 2 : index
    %c56_71 = arith.constant 56 : index
    %129 = vector.load %arg6[%c2_70, %c56_71] : memref<4x128xf32, #tpu.memory_space<vmem>>, vector<1x8xf32>
    tpu.vector_store %arg6[%c2_70, %c56_71], %127 {strides = array<i32>} : memref<4x128xf32, #tpu.memory_space<vmem>>, vector<1x8xf32>,
    %c9 = arith.constant 9 : index
    %c0_72 = arith.constant 0 : index
    %130 = vector.load %arg7[%c9, %c0_72] : memref<16x8xf32, #tpu.memory_space<vmem>>, vector<1x8xf32>
    tpu.vector_store %arg7[%c9, %c0_72], %127 {strides = array<i32>} : memref<16x8xf32, #tpu.memory_space<vmem>>, vector<1x8xf32>,
    %c10_i32 = arith.constant 10 : i32
    %131 = arith.addi %0, %c10_i32 : i32
    %132 = arith.index_cast %131 : i32 to index
    %133 = memref.load %arg1[%132] : memref<16xi32, #tpu.memory_space<smem>>
    %c10_i32_73 = arith.constant 10 : i32
    %134 = arith.addi %0, %c10_i32_73 : i32
    %135 = arith.index_cast %134 : i32 to index
    %136 = memref.load %arg2[%135] : memref<16xi32, #tpu.memory_space<smem>>
    %137 = arith.index_cast %133 : i32 to index
    %c0_74 = arith.constant 0 : index
    %138 = vector.load %arg3[%137, %c0_74] : memref<40x24xf32, #tpu.memory_space<vmem>>, vector<1x24xf32>
    %139 = arith.index_cast %136 : i32 to index
    %c0_75 = arith.constant 0 : index
    %140 = vector.load %arg4[%139, %c0_75] : memref<6x8xf32, #tpu.memory_space<vmem>>, vector<1x8xf32>
    %c2_76 = arith.constant 2 : index
    %c64_77 = arith.constant 64 : index
    %141 = vector.load %arg6[%c2_76, %c64_77] : memref<4x128xf32, #tpu.memory_space<vmem>>, vector<1x24xf32>
    tpu.vector_store %arg6[%c2_76, %c64_77], %138 {strides = array<i32>} : memref<4x128xf32, #tpu.memory_space<vmem>>, vector<1x24xf32>,
    %c2_78 = arith.constant 2 : index
    %c88_79 = arith.constant 88 : index
    %142 = vector.load %arg6[%c2_78, %c88_79] : memref<4x128xf32, #tpu.memory_space<vmem>>, vector<1x8xf32>
    tpu.vector_store %arg6[%c2_78, %c88_79], %140 {strides = array<i32>} : memref<4x128xf32, #tpu.memory_space<vmem>>, vector<1x8xf32>,
    %c10 = arith.constant 10 : index
    %c0_80 = arith.constant 0 : index
    %143 = vector.load %arg7[%c10, %c0_80] : memref<16x8xf32, #tpu.memory_space<vmem>>, vector<1x8xf32>
    tpu.vector_store %arg7[%c10, %c0_80], %140 {strides = array<i32>} : memref<16x8xf32, #tpu.memory_space<vmem>>, vector<1x8xf32>,
    %c11_i32 = arith.constant 11 : i32
    %144 = arith.addi %0, %c11_i32 : i32
    %145 = arith.index_cast %144 : i32 to index
    %146 = memref.load %arg1[%145] : memref<16xi32, #tpu.memory_space<smem>>
    %c11_i32_81 = arith.constant 11 : i32
    %147 = arith.addi %0, %c11_i32_81 : i32
    %148 = arith.index_cast %147 : i32 to index
    %149 = memref.load %arg2[%148] : memref<16xi32, #tpu.memory_space<smem>>
    %150 = arith.index_cast %146 : i32 to index
    %c0_82 = arith.constant 0 : index
    %151 = vector.load %arg3[%150, %c0_82] : memref<40x24xf32, #tpu.memory_space<vmem>>, vector<1x24xf32>
    %152 = arith.index_cast %149 : i32 to index
    %c0_83 = arith.constant 0 : index
    %153 = vector.load %arg4[%152, %c0_83] : memref<6x8xf32, #tpu.memory_space<vmem>>, vector<1x8xf32>
    %c2_84 = arith.constant 2 : index
    %c96_85 = arith.constant 96 : index
    %154 = vector.load %arg6[%c2_84, %c96_85] : memref<4x128xf32, #tpu.memory_space<vmem>>, vector<1x24xf32>
    tpu.vector_store %arg6[%c2_84, %c96_85], %151 {strides = array<i32>} : memref<4x128xf32, #tpu.memory_space<vmem>>, vector<1x24xf32>,
    %c2_86 = arith.constant 2 : index
    %c120_87 = arith.constant 120 : index
    %155 = vector.load %arg6[%c2_86, %c120_87] : memref<4x128xf32, #tpu.memory_space<vmem>>, vector<1x8xf32>
    tpu.vector_store %arg6[%c2_86, %c120_87], %153 {strides = array<i32>} : memref<4x128xf32, #tpu.memory_space<vmem>>, vector<1x8xf32>,
    %c11 = arith.constant 11 : index
    %c0_88 = arith.constant 0 : index
    %156 = vector.load %arg7[%c11, %c0_88] : memref<16x8xf32, #tpu.memory_space<vmem>>, vector<1x8xf32>
    tpu.vector_store %arg7[%c11, %c0_88], %153 {strides = array<i32>} : memref<16x8xf32, #tpu.memory_space<vmem>>, vector<1x8xf32>,
    %c12_i32 = arith.constant 12 : i32
    %157 = arith.addi %0, %c12_i32 : i32
    %158 = arith.index_cast %157 : i32 to index
    %159 = memref.load %arg1[%158] : memref<16xi32, #tpu.memory_space<smem>>
    %c12_i32_89 = arith.constant 12 : i32
    %160 = arith.addi %0, %c12_i32_89 : i32
    %161 = arith.index_cast %160 : i32 to index
    %162 = memref.load %arg2[%161] : memref<16xi32, #tpu.memory_space<smem>>
    %163 = arith.index_cast %159 : i32 to index
    %c0_90 = arith.constant 0 : index
    %164 = vector.load %arg3[%163, %c0_90] : memref<40x24xf32, #tpu.memory_space<vmem>>, vector<1x24xf32>
    %165 = arith.index_cast %162 : i32 to index
    %c0_91 = arith.constant 0 : index
    %166 = vector.load %arg4[%165, %c0_91] : memref<6x8xf32, #tpu.memory_space<vmem>>, vector<1x8xf32>
    %c3_92 = arith.constant 3 : index
    %c0_93 = arith.constant 0 : index
    %167 = vector.load %arg6[%c3_92, %c0_93] : memref<4x128xf32, #tpu.memory_space<vmem>>, vector<1x24xf32>
    tpu.vector_store %arg6[%c3_92, %c0_93], %164 {strides = array<i32>} : memref<4x128xf32, #tpu.memory_space<vmem>>, vector<1x24xf32>,
    %c3_94 = arith.constant 3 : index
    %c24_95 = arith.constant 24 : index
    %168 = vector.load %arg6[%c3_94, %c24_95] : memref<4x128xf32, #tpu.memory_space<vmem>>, vector<1x8xf32>
    tpu.vector_store %arg6[%c3_94, %c24_95], %166 {strides = array<i32>} : memref<4x128xf32, #tpu.memory_space<vmem>>, vector<1x8xf32>,
    %c12 = arith.constant 12 : index
    %c0_96 = arith.constant 0 : index
    %169 = vector.load %arg7[%c12, %c0_96] : memref<16x8xf32, #tpu.memory_space<vmem>>, vector<1x8xf32>
    tpu.vector_store %arg7[%c12, %c0_96], %166 {strides = array<i32>} : memref<16x8xf32, #tpu.memory_space<vmem>>, vector<1x8xf32>,
    %c13_i32 = arith.constant 13 : i32
    %170 = arith.addi %0, %c13_i32 : i32
    %171 = arith.index_cast %170 : i32 to index
    %172 = memref.load %arg1[%171] : memref<16xi32, #tpu.memory_space<smem>>
    %c13_i32_97 = arith.constant 13 : i32
    %173 = arith.addi %0, %c13_i32_97 : i32
    %174 = arith.index_cast %173 : i32 to index
    %175 = memref.load %arg2[%174] : memref<16xi32, #tpu.memory_space<smem>>
    %176 = arith.index_cast %172 : i32 to index
    %c0_98 = arith.constant 0 : index
    %177 = vector.load %arg3[%176, %c0_98] : memref<40x24xf32, #tpu.memory_space<vmem>>, vector<1x24xf32>
    %178 = arith.index_cast %175 : i32 to index
    %c0_99 = arith.constant 0 : index
    %179 = vector.load %arg4[%178, %c0_99] : memref<6x8xf32, #tpu.memory_space<vmem>>, vector<1x8xf32>
    %c3_100 = arith.constant 3 : index
    %c32_101 = arith.constant 32 : index
    %180 = vector.load %arg6[%c3_100, %c32_101] : memref<4x128xf32, #tpu.memory_space<vmem>>, vector<1x24xf32>
    tpu.vector_store %arg6[%c3_100, %c32_101], %177 {strides = array<i32>} : memref<4x128xf32, #tpu.memory_space<vmem>>, vector<1x24xf32>,
    %c3_102 = arith.constant 3 : index
    %c56_103 = arith.constant 56 : index
    %181 = vector.load %arg6[%c3_102, %c56_103] : memref<4x128xf32, #tpu.memory_space<vmem>>, vector<1x8xf32>
    tpu.vector_store %arg6[%c3_102, %c56_103], %179 {strides = array<i32>} : memref<4x128xf32, #tpu.memory_space<vmem>>, vector<1x8xf32>,
    %c13 = arith.constant 13 : index
    %c0_104 = arith.constant 0 : index
    %182 = vector.load %arg7[%c13, %c0_104] : memref<16x8xf32, #tpu.memory_space<vmem>>, vector<1x8xf32>
    tpu.vector_store %arg7[%c13, %c0_104], %179 {strides = array<i32>} : memref<16x8xf32, #tpu.memory_space<vmem>>, vector<1x8xf32>,
    %c14_i32 = arith.constant 14 : i32
    %183 = arith.addi %0, %c14_i32 : i32
    %184 = arith.index_cast %183 : i32 to index
    %185 = memref.load %arg1[%184] : memref<16xi32, #tpu.memory_space<smem>>
    %c14_i32_105 = arith.constant 14 : i32
    %186 = arith.addi %0, %c14_i32_105 : i32
    %187 = arith.index_cast %186 : i32 to index
    %188 = memref.load %arg2[%187] : memref<16xi32, #tpu.memory_space<smem>>
    %189 = arith.index_cast %185 : i32 to index
    %c0_106 = arith.constant 0 : index
    %190 = vector.load %arg3[%189, %c0_106] : memref<40x24xf32, #tpu.memory_space<vmem>>, vector<1x24xf32>
    %191 = arith.index_cast %188 : i32 to index
    %c0_107 = arith.constant 0 : index
    %192 = vector.load %arg4[%191, %c0_107] : memref<6x8xf32, #tpu.memory_space<vmem>>, vector<1x8xf32>
    %c3_108 = arith.constant 3 : index
    %c64_109 = arith.constant 64 : index
    %193 = vector.load %arg6[%c3_108, %c64_109] : memref<4x128xf32, #tpu.memory_space<vmem>>, vector<1x24xf32>
    tpu.vector_store %arg6[%c3_108, %c64_109], %190 {strides = array<i32>} : memref<4x128xf32, #tpu.memory_space<vmem>>, vector<1x24xf32>,
    %c3_110 = arith.constant 3 : index
    %c88_111 = arith.constant 88 : index
    %194 = vector.load %arg6[%c3_110, %c88_111] : memref<4x128xf32, #tpu.memory_space<vmem>>, vector<1x8xf32>
    tpu.vector_store %arg6[%c3_110, %c88_111], %192 {strides = array<i32>} : memref<4x128xf32, #tpu.memory_space<vmem>>, vector<1x8xf32>,
    %c14 = arith.constant 14 : index
    %c0_112 = arith.constant 0 : index
    %195 = vector.load %arg7[%c14, %c0_112] : memref<16x8xf32, #tpu.memory_space<vmem>>, vector<1x8xf32>
    tpu.vector_store %arg7[%c14, %c0_112], %192 {strides = array<i32>} : memref<16x8xf32, #tpu.memory_space<vmem>>, vector<1x8xf32>,
    %c15_i32 = arith.constant 15 : i32
    %196 = arith.addi %0, %c15_i32 : i32
    %197 = arith.index_cast %196 : i32 to index
    %198 = memref.load %arg1[%197] : memref<16xi32, #tpu.memory_space<smem>>
    %c15_i32_113 = arith.constant 15 : i32
    %199 = arith.addi %0, %c15_i32_113 : i32
    %200 = arith.index_cast %199 : i32 to index
    %201 = memref.load %arg2[%200] : memref<16xi32, #tpu.memory_space<smem>>
    %202 = arith.index_cast %198 : i32 to index
    %c0_114 = arith.constant 0 : index
    %203 = vector.load %arg3[%202, %c0_114] : memref<40x24xf32, #tpu.memory_space<vmem>>, vector<1x24xf32>
    %204 = arith.index_cast %201 : i32 to index
    %c0_115 = arith.constant 0 : index
    %205 = vector.load %arg4[%204, %c0_115] : memref<6x8xf32, #tpu.memory_space<vmem>>, vector<1x8xf32>
    %c3_116 = arith.constant 3 : index
    %c96_117 = arith.constant 96 : index
    %206 = vector.load %arg6[%c3_116, %c96_117] : memref<4x128xf32, #tpu.memory_space<vmem>>, vector<1x24xf32>
    tpu.vector_store %arg6[%c3_116, %c96_117], %203 {strides = array<i32>} : memref<4x128xf32, #tpu.memory_space<vmem>>, vector<1x24xf32>,
    %c3_118 = arith.constant 3 : index
    %c120_119 = arith.constant 120 : index
    %207 = vector.load %arg6[%c3_118, %c120_119] : memref<4x128xf32, #tpu.memory_space<vmem>>, vector<1x8xf32>
    tpu.vector_store %arg6[%c3_118, %c120_119], %205 {strides = array<i32>} : memref<4x128xf32, #tpu.memory_space<vmem>>, vector<1x8xf32>,
    %c15 = arith.constant 15 : index
    %c0_120 = arith.constant 0 : index
    %208 = vector.load %arg7[%c15, %c0_120] : memref<16x8xf32, #tpu.memory_space<vmem>>, vector<1x8xf32>
    tpu.vector_store %arg7[%c15, %c0_120], %205 {strides = array<i32>} : memref<16x8xf32, #tpu.memory_space<vmem>>, vector<1x8xf32>,
    %c0_121 = arith.constant 0 : index
    %c0_122 = arith.constant 0 : index
    %209 = vector.load %arg6[%c0_121, %c0_122] : memref<4x128xf32, #tpu.memory_space<vmem>>, vector<4x128xf32>
    %c0_123 = arith.constant 0 : index
    %c0_124 = arith.constant 0 : index
    %210 = vector.load %arg5[%c0_123, %c0_124] : memref<4x128xf32, #tpu.memory_space<vmem>>, vector<4x128xf32>
    %211 = arith.addf %209, %210 : vector<4x128xf32>
    %c0_125 = arith.constant 0 : index
    %c0_126 = arith.constant 0 : index
    %212 = vector.load %arg6[%c0_125, %c0_126] : memref<4x128xf32, #tpu.memory_space<vmem>>, vector<4x128xf32>
    tpu.vector_store %arg6[%c0_125, %c0_126], %211 {strides = array<i32>} : memref<4x128xf32, #tpu.memory_space<vmem>>, vector<4x128xf32>,
    return
  }
  func.func @transform_0(%arg0: i32, %arg1: memref<16xi32, #tpu.memory_space<smem>>, %arg2: memref<16xi32, #tpu.memory_space<smem>>) -> (i32, i32) {
    %c0_i32 = arith.constant 0 : i32
    %c0_i32_0 = arith.constant 0 : i32
    %c0_i32_1 = arith.constant 0 : i32
    return %c0_i32, %c0_i32_0 : i32, i32
  }
  func.func @transform_1(%arg0: i32, %arg1: memref<16xi32, #tpu.memory_space<smem>>, %arg2: memref<16xi32, #tpu.memory_space<smem>>) -> (i32, i32) {
    %c0_i32 = arith.constant 0 : i32
    %c0_i32_0 = arith.constant 0 : i32
    %c0_i32_1 = arith.constant 0 : i32
    return %c0_i32, %c0_i32_0 : i32, i32
  }
  func.func @transform_2(%arg0: i32, %arg1: memref<16xi32, #tpu.memory_space<smem>>, %arg2: memref<16xi32, #tpu.memory_space<smem>>) -> (i32, i32) {
    %c0_i32 = arith.constant 0 : i32
    %c0_i32_0 = arith.constant 0 : i32
    %c0_i32_1 = arith.constant 0 : i32
    return %c0_i32, %c0_i32_0 : i32, i32
  }
  func.func @transform_3(%arg0: i32, %arg1: memref<16xi32, #tpu.memory_space<smem>>, %arg2: memref<16xi32, #tpu.memory_space<smem>>) -> (i32, i32) {
    %c0_i32 = arith.constant 0 : i32
    %c0_i32_0 = arith.constant 0 : i32
    return %arg0, %c0_i32 : i32, i32
  }
  func.func @transform_4(%arg0: i32, %arg1: memref<16xi32, #tpu.memory_space<smem>>, %arg2: memref<16xi32, #tpu.memory_space<smem>>) -> (i32, i32) {
    %c0_i32 = arith.constant 0 : i32
    %c0_i32_0 = arith.constant 0 : i32
    return %arg0, %c0_i32 : i32, i32
  }
}

</mosaic_0001>

<bundles_post_ra>
// kernel: tile.8
= control target key start
LH: loop header
LB: loop body
LE: loop exit
PB: predicated region body
PF: predicated region fallthrough
CT: control target
= control target key end

     0   :  { %s28_s0 = inlined_call_operand.vmem [shape: f32[8,32], index: 0, kind: input, shape index: {}]   ;;  %s29_s1 = inlined_call_operand.vmem [shape: f32[2,8,1,32], index: 1, kind: output, shape index: {}]  }
   0x1   :  { %v4_v0 = vld [vmem:[%s28_s0] sm:$0xff] }
   0x2   :  { %5 = vst [vmem:[%s29_s1] sm:$0xff] %v4_v0  ;;  %8 = vst [vmem:[%s29_s1 + $0x8] sm:$0xff] %v4_v0 }

// kernel: tile.9
= control target key start
LH: loop header
LB: loop body
LE: loop exit
PB: predicated region body
PF: predicated region fallthrough
CT: control target
= control target key end

     0   :  { %s35_s8 = smov 96   ;;  %vm3_vm0 = vcmask 261120   ;;  %s37_s15 = smov 64   ;;  %vm9_vm1 = vcmask 1048320   ;;  %vm15_vm2 = vcmask 785920   ;;  %vm21_vm3 = vcmask 523520   ;;  %s63_s0 = inlined_call_operand.vmem [shape: f32[2,8,1,32], index: 0, kind: input, shape index: {}]   ;;  %s64_s1 = inlined_call_operand.vmem [shape: f32[4,128], index: 1, kind: output, shape index: {}]  }
   0x1   :  { %v29_v0 = vld [vmem:[%s63_s0 + $0x3] ss:$4 sm:$0xf]   ;;  %v30_v1 = vld [vmem:[%s63_s0 + $0x2] ss:$4 sm:$0xf]  }
   0x2   :  { %7 = vrot.lane.b32.xlu0 %v29_v0, %s35_s8  ;;  %v31_v2 = vld [vmem:[%s63_s0 + $0x1] ss:$4 sm:$0xf]   ;;  %v2_v3 = vld [vmem:[%s63_s0] ss:$4 sm:$0xf]  }
   0x3   :  { %s36_s0 = smov 32   ;;  %4 = vst.msk [vmem:[#allocation0] sm:$0xf] %vm3_vm0, %v2_v3  }
   0x4   :  { %19 = vrot.lane.b32.xlu1 %v31_v2, %s36_s0 }
   0x6   :  { %13 = vrot.lane.b32.xlu0 %v30_v1, %s37_s15 }
  0x74   :  { %v8_v4 = vpop.permute.xlu0 %7  }
  0x75   :  { %10 = vst.msk [vmem:[#allocation0] sm:$0xf] %vm9_vm1, %v8_v4  }
  0x76   :  { %v20_v5 = vpop.permute.xlu1 %19  }
  0x78   :  { %v14_v6 = vpop.permute.xlu0 %13  }
  0x79   :  { %16 = vst.msk [vmem:[#allocation0] sm:$0xf] %vm15_vm2, %v14_v6  }
  0x7a   :  { %22 = vst.msk [vmem:[#allocation0] sm:$0xf] %vm21_vm3, %v20_v5  }
  0x81   :  { %v26_v7 = vld [vmem:[#allocation0] sm:$0xf] }
  0x82   :  { %28 = vst [vmem:[%s64_s1] sm:$0xf] %v26_v7 }

// kernel: bert_user_embedding.1
= control target key start
LH: loop header
LB: loop body
LE: loop exit
PB: predicated region body
PF: predicated region fallthrough
CT: control target
= control target key end

     0   :  { %s794_s0 = inlined_call_operand.vmem [shape: s32[16], index: 0, kind: input, shape index: {}]   ;;  %s795_s2 = inlined_call_operand.vmem [shape: f32[40,24], index: 2, kind: input, shape index: {}]   ;;  %s796_s3 = inlined_call_operand.vmem [shape: f32[6,8], index: 3, kind: input, shape index: {}]   ;;  %s797_s4 = inlined_call_operand.vmem [shape: f32[4,128], index: 4, kind: input, shape index: {}]   ;;  %s798_s5 = inlined_call_operand.vmem [shape: f32[4,128], index: 5, kind: output, shape index: {0}]   ;;  %s799_s6 = inlined_call_operand.hbm [shape: f32[16,8], index: 6, kind: output, shape index: {1}]   ;;  %s800_s1 = inlined_call_operand.vmem [shape: s32[16], index: 1, kind: input, shape index: {}]  }
   0x1   :  { %s12_s23 = sshll.u32 %s794_s0, 4  ;;  %s16_s26 = sshll.u32 %s800_s1, 4  ;;  %s13_s23 = int_to_ptr.vmem [resolvable:$true] %s12_s23  ;;  %s17_s26 = int_to_ptr.vmem [resolvable:$true] %s16_s26 }
   0x2   :  { %s408_s27 = scalar_lea.vmem %s13_s23, 16  ;;  %p413_p1 = scmp.lt.s32.totalorder %s13_s23, %s13_s23 }
   0x3   :  { %p409_p0 = scmp.ne.s32.totalorder %s13_s23, %s408_s27  ;;  %p414_p2 = scmp.lt.s32.totalorder %s408_s27, %s408_s27 }
   0x5   :  { %p415_p3 = por %p414_p2, %p413_p1 }
   0x7   :  { %p416_p4 = pnand %p415_p3, %p409_p0 }
   0x9   :  { %419 = shalt.err (!%p416_p4)  }
   0xa   :  { %s458_s28 = smov [#allocation3]   ;;  %s420_s29 = scalar_lea.vmem %s17_s26, 16 }
   0xb   :  { %15 = dma.vmem_to_smem %s13_s23, 16, %s458_s28, [#allocation2] }
   0xc   :  { %p421_p5 = scmp.ne.s32.totalorder %s17_s26, %s420_s29  ;;  %p425_p6 = scmp.lt.s32.totalorder %s17_s26, %s17_s26 }
   0xd   :  { %p426_p7 = scmp.lt.s32.totalorder %s420_s29, %s420_s29 }
   0xf   :  { %p427_p8 = por %p426_p7, %p425_p6 }
  0x11   :  { %p428_p9 = pnand %p427_p8, %p421_p5 }
  0x13   :  { %431 = shalt.err (!%p428_p9)  }
  0x14   :  { %s459_s0 = smov [#allocation4]  }
  0x15   :  { %19 = dma.vmem_to_smem %s17_s26, 16, %s459_s0, [#allocation2] }
  0x16   :  { %454 = dma.done.wait [#allocation2], 32 }
  0x17   :  { %455 = vsyncadd [#allocation2], 4294967264 }
  0x18   :  { %21 = sfence }
  0x19   :  { %s381_s1 = sld [smem:[#allocation4 + $0x8]]  ;;  %s389_s7 = sld [smem:[#allocation4 + $0xc]] }
  0x1a   :  { %s31_s30 = sld [smem:[#allocation4]]  ;;  %s373_s8 = sld [smem:[#allocation4 + $0x4]] }
  0x1b   :  { %22 = vsyncpa [#allocation6], 0  ;;  %s511_s9 = sld [smem:[#allocation3 + $0x5]]  ;;  %s513_s10 = sld [smem:[#allocation3 + $0x1]]  ;;  %vm44_vm0 = vcmask 57344   ;;  %vm36_vm1 = vcmask 188416  }
  0x1c   :  { %s515_s11 = sld [smem:[#allocation3 + $0xd]]  ;;  %s517_s12 = sld [smem:[#allocation3 + $0x9]] }
  0x1d   :  { %s375_s13 = sld [smem:[#allocation4 + $0x5]]  ;;  %s367_s17 = sld [smem:[#allocation4 + $0x1]] }
  0x1e   :  { %s460_s24 = smov 24   ;;  %s391_s28 = sld [smem:[#allocation4 + $0xd]] }
  0x1f   :  { %s179_s16 = scalar_lea.vmem %s796_s3, %s381_s1  ;;  %s247_s23 = scalar_lea.vmem %s796_s3, %s389_s7 }
  0x20   :  { %v180_v0 = vld [vmem:[%s179_s16] sm:$0x1]  ;;  %s34_s20 = scalar_lea.vmem %s796_s3, %s31_s30  ;;  %s111_s27 = scalar_lea.vmem %s796_s3, %s373_s8 }
  0x21   :  { %187 = vst.msk [vmem:[#allocation5 + $0x8] sm:$0x1] %vm44_vm0, %v180_v0  ;;  %183 = vrot.lane.b32.xlu1 %v180_v0, %s460_s24  ;;  %v35_v1 = vld [vmem:[%s34_s20] sm:$0x1]  ;;  %s123_s1 = scalar_lea.vmem %s795_s2, %s511_s9  ;;  %s49_s14 = scalar_lea.vmem %s795_s2, %s513_s10 }
  0x22   :  { %v248_v2 = vld [vmem:[%s247_s23] sm:$0x1]  ;;  %39 = vrot.lane.b32.xlu0 %v35_v1, %s460_s24  ;;  %45 = vst.msk [vmem:[#allocation5] sm:$0x1] %vm44_vm0, %v35_v1  ;;  %s383_s18 = sld [smem:[#allocation4 + $0x9]]  ;;  %s259_s9 = scalar_lea.vmem %s795_s2, %s515_s11 }
  0x23   :  { %255 = vst.msk [vmem:[#allocation5 + $0xc] sm:$0x1] %vm44_vm0, %v248_v2  ;;  %v112_v3 = vld [vmem:[%s111_s27] sm:$0x1]  ;;  %s125_s16 = scalar_lea.vmem %s796_s3, %s375_s13  ;;  %s51_s21 = scalar_lea.vmem %s796_s3, %s367_s17 }
  0x24   :  { %119 = vst.msk [vmem:[#allocation5 + $0x4] sm:$0x1] %vm44_vm0, %v112_v3  ;;  %v126_v4 = vld [vmem:[%s125_s16] sm:$0x1]  ;;  %s191_s13 = scalar_lea.vmem %s795_s2, %s517_s12  ;;  %s261_s17 = scalar_lea.vmem %s796_s3, %s391_s28 }
  0x25   :  { %251 = vrot.lane.b32.xlu1 %v248_v2, %s460_s24  ;;  %v124_v5 = vld [vmem:[%s123_s1] sm:$0x1]  ;;  %137 = vst.msk [vmem:[#allocation5 + $0x5] sm:$0x1] %vm44_vm0, %v126_v4  ;;  %s377_s11 = sld [smem:[#allocation4 + $0x6]]  ;;  %s369_s29 = sld [smem:[#allocation4 + $0x2]] }
  0x26   :  { %115 = vrot.lane.b32.xlu0 %v112_v3, %s460_s24  ;;  %v52_v6 = vld [vmem:[%s51_s21] sm:$0x1]  ;;  %s461_s24 = smov 32   ;;  %s393_s30 = sld [smem:[#allocation4 + $0xe]] }
  0x27   :  { %v50_v7 = vld [vmem:[%s49_s14] sm:$0x1]  ;;  %65 = vst.msk [vmem:[#allocation5 + $0x1] sm:$0x1] %vm44_vm0, %v52_v6  ;;  %s566_s7 = sld [smem:[#allocation3 + $0x6]]  ;;  %s385_s14 = sld [smem:[#allocation4 + $0xa]] }
  0x28   :  { %v262_v8 = vld [vmem:[%s261_s17] sm:$0x1]  ;;  %s193_s12 = scalar_lea.vmem %s796_s3, %s383_s18  ;;  %s569_s28 = sld [smem:[#allocation3 + $0x2]] }
  0x29   :  { %128 = vrot.lane.b32.xlu1 %v124_v5, %s461_s24  ;;  %273 = vst.msk [vmem:[#allocation5 + $0xd] sm:$0x1] %vm44_vm0, %v262_v8  ;;  %v260_v9 = vld [vmem:[%s259_s9] sm:$0x1]  ;;  %s571_s8 = sld [smem:[#allocation3 + $0xe]]  ;;  %s573_s15 = sld [smem:[#allocation3 + $0xa]] }
  0x2a   :  { %54 = vrot.lane.b32.xlu0 %v50_v7, %s461_s24  ;;  %v192_v10 = vld [vmem:[%s191_s13] sm:$0x1]  ;;  %s462_s25 = smov 56   ;;  %s379_s17 = sld [smem:[#allocation4 + $0x7]] }
  0x2b   :  { %v194_v11 = vld [vmem:[%s193_s12] sm:$0x1]  ;;  %s143_s18 = scalar_lea.vmem %s796_s3, %s377_s11  ;;  %s71_s22 = scalar_lea.vmem %s796_s3, %s369_s29 }
  0x2c   :  { %205 = vst.msk [vmem:[#allocation5 + $0x9] sm:$0x1] %vm44_vm0, %v194_v11  ;;  %v581_v12 = vld [vmem:[%s143_s18] sm:$0x1]  ;;  %s279_s10 = scalar_lea.vmem %s796_s3, %s393_s30  ;;  %s371_s0 = sld [smem:[#allocation4 + $0x3]] }
  0x2d   :  { %264 = vrot.lane.b32.xlu1 %v260_v9, %s461_s24  ;;  %v583_v13 = vld [vmem:[%s71_s22] sm:$0x1]  ;;  %155 = vst.msk [vmem:[#allocation5 + $0x6] sm:$0x1] %vm44_vm0, %v581_v12  ;;  %s211_s27 = scalar_lea.vmem %s796_s3, %s385_s14  ;;  %s141_s29 = scalar_lea.vmem %s795_s2, %s566_s7 }
  0x2e   :  { %196 = vrot.lane.b32.xlu0 %v192_v10, %s461_s24  ;;  %85 = vst.msk [vmem:[#allocation5 + $0x2] sm:$0x1] %vm44_vm0, %v583_v13  ;;  %v280_v14 = vld [vmem:[%s279_s10] sm:$0x1]  ;;  %s69_s30 = scalar_lea.vmem %s795_s2, %s569_s28  ;;  %s395_s16 = sld [smem:[#allocation4 + $0xf]] }
  0x2f   :  { %291 = vst.msk [vmem:[#allocation5 + $0xe] sm:$0x1] %vm44_vm0, %v280_v14  ;;  %v212_v15 = vld [vmem:[%s211_s27] sm:$0x1]  ;;  %s605_s14 = sld [smem:[#allocation4 + $0xb]]  ;;  %s607_s19 = sld [smem:[#allocation3 + $0x8]] }
  0x30   :  { %223 = vst.msk [vmem:[#allocation5 + $0xa] sm:$0x1] %vm44_vm0, %v212_v15  ;;  %v142_v16 = vld [vmem:[%s141_s29] sm:$0x1]  ;;  %s277_s21 = scalar_lea.vmem %s795_s2, %s571_s8  ;;  %s613_s7 = sld [smem:[#allocation3]] }
  0x31   :  { %133 = vrot.lane.b32.xlu1 %v126_v4, %s462_s25  ;;  %v70_v17 = vld [vmem:[%s69_s30] sm:$0x1]  ;;  %s209_s9 = scalar_lea.vmem %s795_s2, %s573_s15  ;;  %s619_s28 = sld [smem:[#allocation3 + $0xc]] }
  0x32   :  { %60 = vrot.lane.b32.xlu0 %v52_v6, %s462_s25  ;;  %s161_s26 = scalar_lea.vmem %s796_s3, %s379_s17  ;;  %s463_s27 = smov 64   ;;  %v278_v19 = vld [vmem:[%s277_s21] sm:$0x1] }
  0x33   :  { %v162_v18 = vld [vmem:[%s161_s26] sm:$0x1]  ;;  %s91_s11 = scalar_lea.vmem %s796_s3, %s371_s0  ;;  %s629_s15 = sld [smem:[#allocation3 + $0x7]] }
  0x34   :  { %173 = vst.msk [vmem:[#allocation5 + $0x7] sm:$0x1] %vm44_vm0, %v162_v18  ;;  %v92_v20 = vld [vmem:[%s91_s11] sm:$0x1]  ;;  %s297_s1 = scalar_lea.vmem %s796_s3, %s395_s16  ;;  %s370_s22 = sld [smem:[#allocation3 + $0x3]] }
  0x35   :  { %269 = vrot.lane.b32.xlu1 %v262_v8, %s462_s25  ;;  %v210_v21 = vld [vmem:[%s209_s9] sm:$0x1]  ;;  %105 = vst.msk [vmem:[#allocation5 + $0x3] sm:$0x1] %vm44_vm0, %v92_v20  ;;  %s229_s30 = scalar_lea.vmem %s796_s3, %s605_s14  ;;  %s177_s21 = scalar_lea.vmem %s795_s2, %s607_s19 }
  0x36   :  { %201 = vrot.lane.b32.xlu0 %v194_v11, %s462_s25  ;;  %s624_s25 = sld [smem:[#allocation3 + $0x4]]  ;;  %v298_v22 = vld [vmem:[%s297_s1] sm:$0x1]  ;;  %s32_s9 = scalar_lea.vmem %s795_s2, %s613_s7 }
  0x37   :  { %309 = vst.msk [vmem:[#allocation5 + $0xf] sm:$0x1] %vm44_vm0, %v298_v22  ;;  %v230_v23 = vld [vmem:[%s229_s30] sm:$0x1]  ;;  %s245_s19 = scalar_lea.vmem %s795_s2, %s619_s28  ;;  %s394_s17 = sld [smem:[#allocation3 + $0xf]] }
  0x38   :  { %v178_v24 = vld [vmem:[%s177_s21] sm:$0x1]  ;;  %241 = vst.msk [vmem:[#allocation5 + $0xb] sm:$0x1] %vm44_vm0, %v230_v23  ;;  %s386_s12 = sld [smem:[#allocation3 + $0xb]]  ;;  %s464_s0 = smov 88  }
  0x39   :  { %146 = vrot.lane.b32.xlu1 %v142_v16, %s463_s27  ;;  %181 = vst.msk [vmem:[%s798_s5 + $0x2] sm:$0x1] %vm36_vm1, %v178_v24  ;;  %v33_v25 = vld [vmem:[%s32_s9] sm:$0x1]  ;;  %s159_s18 = scalar_lea.vmem %s795_s2, %s629_s15  ;;  %s466_s15 = smov 120  }
  0x3a   :  { %74 = vrot.lane.b32.xlu0 %v70_v17, %s463_s27  ;;  %37 = vst.msk [vmem:[%s798_s5] sm:$0x1] %vm36_vm1, %v33_v25  ;;  %v246_v26 = vld [vmem:[%s245_s19] sm:$0x1]  ;;  %s89_s23 = scalar_lea.vmem %s795_s2, %s370_s22  ;;  %s465_s19 = smov 96  }
  0x3b   :  { %249 = vst.msk [vmem:[%s798_s5 + $0x3] sm:$0x1] %vm36_vm1, %v246_v26  ;;  %v160_v28 = vld [vmem:[%s159_s18] sm:$0x1]  ;;  %s467_s22 = smov [#allocation5]  }
  0x3c   :  { %s109_s11 = scalar_lea.vmem %s795_s2, %s624_s25  ;;  %v90_v29 = vld [vmem:[%s89_s23] sm:$0x1]  ;;  %s321_s26 = sshll.u32 %s467_s22, 4  ;;  %s322_s26 = int_to_ptr.vmem [resolvable:$true] %s321_s26 }
  0x3d   :  { %282 = vrot.lane.b32.xlu1 %v278_v19, %s463_s27  ;;  %v110_v27 = vld [vmem:[%s109_s11] sm:$0x1]  ;;  %s295_s10 = scalar_lea.vmem %s795_s2, %s394_s17  ;;  %s432_s8 = scalar_lea.vmem %s322_s26, 256 }
  0x3e   :  { %214 = vrot.lane.b32.xlu0 %v210_v21, %s463_s27  ;;  %113 = vst.msk [vmem:[%s798_s5 + $0x1] sm:$0x1] %vm36_vm1, %v110_v27  ;;  %s227_s14 = scalar_lea.vmem %s795_s2, %s386_s12  ;;  %v296_v30 = vld [vmem:[%s295_s10] sm:$0x1]  ;;  %p433_p10 = scmp.ne.s32.totalorder %s322_s26, %s432_s8 }
  0x3f   :  { %v228_v31 = vld [vmem:[%s227_s14] sm:$0x1]  ;;  %p437_p11 = scmp.lt.s32.totalorder %s322_s26, %s322_s26  ;;  %p438_p12 = scmp.lt.s32.totalorder %s432_s8, %s432_s8 }
  0x41   :  { %151 = vrot.lane.b32.xlu1 %v581_v12, %s464_s0  ;;  %p439_p13 = por %p438_p12, %p437_p11 }
  0x42   :  { %80 = vrot.lane.b32.xlu0 %v583_v13, %s464_s0 }
  0x43   :  { %p440_p0 = pnand %p439_p13, %p433_p10 }
  0x45   :  { %287 = vrot.lane.b32.xlu1 %v280_v14, %s464_s0 }
  0x46   :  { %219 = vrot.lane.b32.xlu0 %v212_v15, %s464_s0 }
  0x49   :  { %164 = vrot.lane.b32.xlu1 %v160_v28, %s465_s19 }
  0x4a   :  { %94 = vrot.lane.b32.xlu0 %v90_v29, %s465_s19 }
  0x4d   :  { %300 = vrot.lane.b32.xlu1 %v296_v30, %s465_s19 }
  0x4e   :  { %232 = vrot.lane.b32.xlu0 %v228_v31, %s465_s19 }
  0x51   :  { %169 = vrot.lane.b32.xlu1 %v162_v18, %s466_s15 }
  0x52   :  { %100 = vrot.lane.b32.xlu0 %v92_v20, %s466_s15 }
  0x53   :  { %443 = shalt.err (!%p440_p0)
}
  0x54   :  { %s444_s24 = scalar_lea.hbm %s799_s6, 256 }
  0x55   :  { %p445_p1 = scmp.ne.s32.totalorder %s799_s6, %s444_s24  ;;  %p448_p2 = scmp.lt.u32.totalorder %s444_s24, %s799_s6 }
  0x57   :  { %p450_p3 = pnand %p448_p2, %p445_p1 }
  0x59   :  { %453 = shalt.err (!%p450_p3)
}
  0x5a   :  { %s468_s12 = smov 128   ;;  %s469_s28 = smov 8   ;;  %305 = vrot.lane.b32.xlu1 %v298_v22, %s466_s15  ;;  %237 = vrot.lane.b32.xlu0 %v230_v23, %s466_s15  ;;  %vm42_vm2 = vcmask 254144   ;;  %vm57_vm3 = vcmask 450816   ;;  %vm63_vm4 = vcmask 516544   ;;  %vm77_vm5 = vcmask 713216  }
  0x5b   :  { %327 = dma.vmem_to_hbm [thread:$0]  %s322_s26, 256, %s799_s6, [#allocation6], %s468_s12, %s468_s12, %s469_s28   ;;  %vm83_vm6 = vcmask 778944   ;;  %vm97_vm7 = vcmask 975616   ;;  %vm103_vm8 = vcmask 1041344  }
  0x5c   :  { %v311_v60 = vld [vmem:[%s797_s4] sm:$0xf] }
  0x93   :  { %v184_v32 = vpop.permute.xlu1 %183 }
  0x94   :  { %186 = vst.msk [vmem:[%s798_s5 + $0x2] sm:$0x1] %vm42_vm2, %v184_v32  ;;  %v40_v33 = vpop.permute.xlu0 %39 }
  0x95   :  { %43 = vst.msk [vmem:[%s798_s5] sm:$0x1] %vm42_vm2, %v40_v33 }
  0x97   :  { %v252_v34 = vpop.permute.xlu1 %251 }
  0x98   :  { %254 = vst.msk [vmem:[%s798_s5 + $0x3] sm:$0x1] %vm42_vm2, %v252_v34  ;;  %v116_v35 = vpop.permute.xlu0 %115 }
  0x99   :  { %118 = vst.msk [vmem:[%s798_s5 + $0x1] sm:$0x1] %vm42_vm2, %v116_v35 }
  0x9b   :  { %v129_v36 = vpop.permute.xlu1 %128 }
  0x9c   :  { %131 = vst.msk [vmem:[%s798_s5 + $0x1] sm:$0x1] %vm57_vm3, %v129_v36  ;;  %v55_v37 = vpop.permute.xlu0 %54 }
  0x9d   :  { %58 = vst.msk [vmem:[%s798_s5] sm:$0x1] %vm57_vm3, %v55_v37 }
  0x9f   :  { %v265_v38 = vpop.permute.xlu1 %264 }
  0xa0   :  { %267 = vst.msk [vmem:[%s798_s5 + $0x3] sm:$0x1] %vm57_vm3, %v265_v38  ;;  %v197_v39 = vpop.permute.xlu0 %196 }
  0xa1   :  { %199 = vst.msk [vmem:[%s798_s5 + $0x2] sm:$0x1] %vm57_vm3, %v197_v39 }
  0xa3   :  { %v134_v40 = vpop.permute.xlu1 %133 }
  0xa4   :  { %136 = vst.msk [vmem:[%s798_s5 + $0x1] sm:$0x1] %vm63_vm4, %v134_v40  ;;  %v61_v41 = vpop.permute.xlu0 %60 }
  0xa5   :  { %64 = vst.msk [vmem:[%s798_s5] sm:$0x1] %vm63_vm4, %v61_v41 }
  0xa7   :  { %v270_v42 = vpop.permute.xlu1 %269 }
  0xa8   :  { %272 = vst.msk [vmem:[%s798_s5 + $0x3] sm:$0x1] %vm63_vm4, %v270_v42  ;;  %v202_v43 = vpop.permute.xlu0 %201 }
  0xa9   :  { %204 = vst.msk [vmem:[%s798_s5 + $0x2] sm:$0x1] %vm63_vm4, %v202_v43 }
  0xab   :  { %v147_v44 = vpop.permute.xlu1 %146 }
  0xac   :  { %149 = vst.msk [vmem:[%s798_s5 + $0x1] sm:$0x1] %vm77_vm5, %v147_v44  ;;  %v75_v45 = vpop.permute.xlu0 %74 }
  0xad   :  { %78 = vst.msk [vmem:[%s798_s5] sm:$0x1] %vm77_vm5, %v75_v45 }
  0xaf   :  { %v283_v46 = vpop.permute.xlu1 %282 }
  0xb0   :  { %285 = vst.msk [vmem:[%s798_s5 + $0x3] sm:$0x1] %vm77_vm5, %v283_v46  ;;  %v215_v47 = vpop.permute.xlu0 %214 }
  0xb1   :  { %217 = vst.msk [vmem:[%s798_s5 + $0x2] sm:$0x1] %vm77_vm5, %v215_v47 }
  0xb3   :  { %v152_v48 = vpop.permute.xlu1 %151 }
  0xb4   :  { %154 = vst.msk [vmem:[%s798_s5 + $0x1] sm:$0x1] %vm83_vm6, %v152_v48  ;;  %v81_v49 = vpop.permute.xlu0 %80 }
  0xb5   :  { %84 = vst.msk [vmem:[%s798_s5] sm:$0x1] %vm83_vm6, %v81_v49 }
  0xb7   :  { %v288_v50 = vpop.permute.xlu1 %287 }
  0xb8   :  { %290 = vst.msk [vmem:[%s798_s5 + $0x3] sm:$0x1] %vm83_vm6, %v288_v50  ;;  %v220_v51 = vpop.permute.xlu0 %219 }
  0xb9   :  { %222 = vst.msk [vmem:[%s798_s5 + $0x2] sm:$0x1] %vm83_vm6, %v220_v51 }
  0xbb   :  { %v165_v52 = vpop.permute.xlu1 %164 }
  0xbc   :  { %167 = vst.msk [vmem:[%s798_s5 + $0x1] sm:$0x1] %vm97_vm7, %v165_v52  ;;  %v95_v53 = vpop.permute.xlu0 %94 }
  0xbd   :  { %98 = vst.msk [vmem:[%s798_s5] sm:$0x1] %vm97_vm7, %v95_v53 }
  0xbf   :  { %v301_v54 = vpop.permute.xlu1 %300 }
  0xc0   :  { %303 = vst.msk [vmem:[%s798_s5 + $0x3] sm:$0x1] %vm97_vm7, %v301_v54  ;;  %v233_v55 = vpop.permute.xlu0 %232 }
  0xc1   :  { %235 = vst.msk [vmem:[%s798_s5 + $0x2] sm:$0x1] %vm97_vm7, %v233_v55 }
  0xc3   :  { %v170_v56 = vpop.permute.xlu1 %169 }
  0xc4   :  { %172 = vst.msk [vmem:[%s798_s5 + $0x1] sm:$0x1] %vm103_vm8, %v170_v56  ;;  %v101_v57 = vpop.permute.xlu0 %100 }
  0xc5   :  { %104 = vst.msk [vmem:[%s798_s5] sm:$0x1] %vm103_vm8, %v101_v57 }
  0xcc   :  { %v306_v58 = vpop.permute.xlu1 %305  ;;  %v238_v59 = vpop.permute.xlu0 %237 }
  0xcd   :  { %308 = vst.msk [vmem:[%s798_s5 + $0x3] sm:$0x1] %vm103_vm8, %v306_v58  ;;  %240 = vst.msk [vmem:[%s798_s5 + $0x2] sm:$0x1] %vm103_vm8, %v238_v59 }
  0xd4   :  { %v310_v61 = vld [vmem:[%s798_s5] sm:$0xf] }
  0xd5   :  { %v312_v62 = vadd.f32 %v311_v60, %v310_v61 }
  0xd7   :  { %313 = vst [vmem:[%s798_s5] sm:$0xf] %v312_v62 }
  0xd8   :  { %456 = dma.done.wait [#allocation6], 256  }
  0xd9   :  { %457 = vsyncadd [#allocation6], 4294967040 }
  0xda   :  { %333 = vsyncpa [#allocation6], 1 }

</bundles_post_ra>
